<compile_context>
chip_gen: v6e
topology: v6e:2x2x1
jax: 0.10.0
libtpu: 0.0.40
codegen_flags: <defaults>
</compile_context>

<pallas_src>
import math

import jax
import jax.numpy as jnp
from jax.experimental import pallas as pl
from jax.experimental.pallas import tpu as pltpu


def _layer_scale_kernel(x_ref, g_ref, o_ref):
    # x_ref: (TM, W) tile, g_ref: (1, W) gamma row (resident: constant index_map).
    # Multiply promotes (e.g. bf16 * f32 -> f32) like torch; cast only at store.
    o_ref[...] = (x_ref[...] * g_ref[...]).astype(o_ref.dtype)


def _layer_scale_pallas(x, gamma, out_dtype, target_block_bytes, lane_target):
    orig_shape = x.shape
    D = orig_shape[-1]
    rows = 1
    for s in orig_shape[:-1]:
        rows *= s

    x_item = jnp.dtype(x.dtype).itemsize
    out_item = jnp.dtype(out_dtype).itemsize
    g_item = jnp.dtype(gamma.dtype).itemsize

    # --- Lane-dense layout: fold `r` consecutive rows into one wide row so the
    # last dim approaches `lane_target` lanes.  gamma is tiled r times so the
    # broadcast pattern is preserved exactly.
    max_r = max(1, lane_target // D)
    r = math.gcd(rows, max_r)          # largest folding factor that divides rows
    W = r * D
    R = rows // r

    x2 = x.reshape(R, W)
    g2 = jnp.tile(gamma, r).reshape(1, W)   # keep gamma's dtype (typically f32)

    # --- Row tile: ~target_block_bytes per input block, aligned to the dtype's
    # sublane packing (8 rows f32, 16 bf16, 32 int8/fp8).
    sub = 8 * max(1, 4 // x_item)
    tm = max(1, target_block_bytes // (W * x_item))
    tm = min(tm, R)
    if tm < R:
        tm = max(sub, (tm // sub) * sub)   # multiple of sublane packing
        tm = min(tm, R)                    # tiny R collapses to full dim (legal)

    grid = (pl.cdiv(R, tm),)               # partial trailing block is masked

    # Scoped-VMEM budget: double-buffered in + out blocks, resident gamma, slack.
    block_bytes = tm * W * (x_item + out_item)
    vmem_limit = int(max(32 << 20, 2 * block_bytes + W * g_item + (2 << 20)))

    out2 = pl.pallas_call(
        _layer_scale_kernel,
        out_shape=jax.ShapeDtypeStruct((R, W), out_dtype),
        grid_spec=pltpu.PrefetchScalarGridSpec(
            num_scalar_prefetch=0,
            grid=grid,
            in_specs=[
                pl.BlockSpec((tm, W), lambda i: (i, 0)),
                pl.BlockSpec((1, W), lambda i: (0, 0)),   # gamma stays resident
            ],
            out_specs=pl.BlockSpec((tm, W), lambda i: (i, 0)),
        ),
        compiler_params=pltpu.CompilerParams(
            dimension_semantics=("parallel",),
            vmem_limit_bytes=vmem_limit,
        ),
    )(x2, g2)

    return out2.reshape(orig_shape)


def layer_scale(x, gamma, *, target_block_bytes=2 << 20,
                min_bytes_for_pallas=1 << 20, lane_target=2048):
    """LayerScale forward: out = x * gamma, gamma (D,) broadcast over last dim.

    Matches PyTorch `x * self.gamma` (out-of-place).  The multiply follows the
    same dtype promotion (e.g. bf16 x * f32 gamma -> f32 out).
    """
    D = x.shape[-1]
    assert gamma.shape == (D,), f"gamma shape {gamma.shape} != ({D},)"

    out_dtype = jnp.promote_types(x.dtype, gamma.dtype)

    if x.size == 0:
        return x.astype(out_dtype)

    # Tiny inputs: a pallas_call's fixed launch/pipeline overhead can never be
    # amortized; let XLA's fused elementwise multiply handle it.
    if x.size * jnp.dtype(x.dtype).itemsize < min_bytes_for_pallas:
        return (x * gamma).astype(out_dtype)

    return _layer_scale_pallas(x, gamma, out_dtype, target_block_bytes, lane_target)


# TODO(synk): the `inplace=True` (x.mul_) variant has no meaning in functional
# JAX; the out-of-place multiply above is mathematically identical.


if __name__ == "__main__":
    key = jax.random.PRNGKey(0)
    k1, k2, k3 = jax.random.split(key, 3)

    init_values = 1e-5

    # --- Test 1: module-shaped example (B, N, D), f32, force the Pallas path.
    B, N, D = 2, 16, 128
    gamma = init_values * jnp.ones((D,), dtype=jnp.float32)
    x = jax.random.normal(k1, (B, N, D), dtype=jnp.float32)

    out = layer_scale(x, gamma, min_bytes_for_pallas=0)
    out = jax.block_until_ready(out)
    ref = x * gamma
    assert out.shape == x.shape and out.dtype == ref.dtype
    assert jnp.allclose(out, ref, atol=1e-6, rtol=1e-6)

    # --- Test 2: ragged row count -> grid > 1 with a masked partial trailing
    # block (small target_block_bytes just to exercise the tiling logic).
    x2 = jax.random.normal(k2, (2, 100, 128), dtype=jnp.float32)
    out2 = layer_scale(x2, gamma, min_bytes_for_pallas=0,
                       target_block_bytes=64 * 1024)
    out2 = jax.block_until_ready(out2)
    ref2 = x2 * gamma
    assert jnp.allclose(out2, ref2, atol=1e-6, rtol=1e-6)

    # --- Test 3: bf16 activations with f32 gamma (torch-like promotion to f32),
    # D not a multiple of 128 (full-dim lane block path).
    D3 = 96
    gamma3 = init_values * jnp.ones((D3,), dtype=jnp.float32)
    x3 = jax.random.normal(k3, (3, 7, D3), dtype=jnp.bfloat16)
    out3 = layer_scale(x3, gamma3, min_bytes_for_pallas=0)
    out3 = jax.block_until_ready(out3)
    ref3 = x3 * gamma3
    assert out3.dtype == ref3.dtype == jnp.float32
    assert jnp.allclose(out3, ref3, atol=1e-6, rtol=1e-6)

    print("KERNEL_OK")
</pallas_src>

<mosaic_0001>
module attributes {stable_mosaic.version = 11 : i64} {
  func.func @_layer_scale_kernel(%arg0: i32, %arg1: memref<2x2048xf32, #tpu.memory_space<vmem>>, %arg2: memref<1x2048xf32, #tpu.memory_space<vmem>>, %arg3: memref<2x2048xf32, #tpu.memory_space<vmem>>) attributes {dimension_semantics = [#tpu.dimension_semantics<parallel>], iteration_bounds = array<i64: 1>, scalar_prefetch = 0 : i64, scratch_operands = 0 : i64, tpu.core_type = #tpu.core_type<tc>, window_params = [{transform_indices = @transform_0, window_bounds = array<i64: 2, 2048>}, {pipeline_mode = #tpu.pipeline_mode<synchronous>, transform_indices = @transform_1, window_bounds = array<i64: 1, 2048>}, {transform_indices = @transform_2, window_bounds = array<i64: 2, 2048>}]} {
    %c0 = arith.constant 0 : index
    %c0_0 = arith.constant 0 : index
    %0 = vector.load %arg1[%c0, %c0_0] : memref<2x2048xf32, #tpu.memory_space<vmem>>, vector<2x2048xf32>
    %c0_1 = arith.constant 0 : index
    %c0_2 = arith.constant 0 : index
    %1 = vector.load %arg2[%c0_1, %c0_2] : memref<1x2048xf32, #tpu.memory_space<vmem>>, vector<1x2048xf32>
    %2 = vector.broadcast %1 : vector<1x2048xf32> to vector<2x2048xf32>
    %3 = arith.mulf %0, %2 : vector<2x2048xf32>
    %c0_3 = arith.constant 0 : index
    %c0_4 = arith.constant 0 : index
    %4 = vector.load %arg3[%c0_3, %c0_4] : memref<2x2048xf32, #tpu.memory_space<vmem>>, vector<2x2048xf32>
    tpu.vector_store %arg3[%c0_3, %c0_4], %3 {strides = array<i32>} : memref<2x2048xf32, #tpu.memory_space<vmem>>, vector<2x2048xf32>,
    return
  }
  func.func @transform_0(%arg0: i32) -> (i32, i32) {
    %c0_i32 = arith.constant 0 : i32
    %c0_i32_0 = arith.constant 0 : i32
    return %arg0, %c0_i32 : i32, i32
  }
  func.func @transform_1(%arg0: i32) -> (i32, i32) {
    %c0_i32 = arith.constant 0 : i32
    %c0_i32_0 = arith.constant 0 : i32
    %c0_i32_1 = arith.constant 0 : i32
    return %c0_i32, %c0_i32_0 : i32, i32
  }
  func.func @transform_2(%arg0: i32) -> (i32, i32) {
    %c0_i32 = arith.constant 0 : i32
    %c0_i32_0 = arith.constant 0 : i32
    return %arg0, %c0_i32 : i32, i32
  }
}

</mosaic_0001>

<bundles_post_ra>
// kernel: tpu_custom_call.1
= control target key start
LH: loop header
LB: loop body
LE: loop exit
PB: predicated region body
PF: predicated region fallthrough
CT: control target
= control target key end

     0   :  { %7 = vsyncpa [#allocation3], 0  ;;  %s302_s0 = inlined_call_operand.hbm [shape: f32[2,2048], index: 0, kind: input, shape index: {}]   ;;  %s303_s1 = inlined_call_operand.hbm [shape: f32[1,2048], index: 1, kind: input, shape index: {}]   ;;  %s304_s2 = inlined_call_operand.hbm [shape: f32[2,2048], index: 2, kind: output, shape index: {}]  }
   0x1   :  { %8 = vsyncpa [#allocation6], 0 }
   0x2   :  { %9 = vsyncpa [#allocation4], 0  ;;  %s274_s9 = smov [#allocation2]   ;;  %s275_s11 = smov [#allocation5]  }
   0x3   :  { %s16_s10 = sshll.u32 %s274_s9, 4  ;;  %s26_s12 = sshll.u32 %s275_s11, 4  ;;  %s17_s10 = int_to_ptr.vmem [resolvable:$true] %s16_s10  ;;  %s27_s12 = int_to_ptr.vmem [resolvable:$true] %s26_s12 }
   0x4   :  { %s216_s13 = scalar_lea.vmem %s17_s10, 512  ;;  %p221_p1 = scmp.lt.s32.totalorder %s17_s10, %s17_s10 }
   0x5   :  { %p217_p0 = scmp.ne.s32.totalorder %s17_s10, %s216_s13  ;;  %p222_p2 = scmp.lt.s32.totalorder %s216_s13, %s216_s13 }
   0x7   :  { %p223_p3 = por %p222_p2, %p221_p1 }
   0x9   :  { %p224_p4 = pnand %p223_p3, %p217_p0 }
   0xb   :  { %227 = shalt.err (!%p224_p4)
}
   0xc   :  { %19 = dma.hbm_to_vmem [thread:$0]  %s302_s0, 512, %s17_s10, [#allocation3]  }
   0xd   :  { %s236_s16 = scalar_lea.vmem %s27_s12, 256  ;;  %p241_p6 = scmp.lt.s32.totalorder %s27_s12, %s27_s12 }
   0xe   :  { %p237_p5 = scmp.ne.s32.totalorder %s27_s12, %s236_s16  ;;  %p242_p7 = scmp.lt.s32.totalorder %s236_s16, %s236_s16 }
  0x10   :  { %p243_p8 = por %p242_p7, %p241_p6 }
  0x12   :  { %p244_p9 = pnand %p243_p8, %p237_p5 }
  0x14   :  { %247 = shalt.err (!%p244_p9)
}
  0x15   :  { %29 = dma.hbm_to_vmem [thread:$0]  %s303_s1, 256, %s27_s12, [#allocation6]  }
  0x16   :  { %268 = dma.done.wait [#allocation3], 512  }
  0x17   :  { %269 = vsyncadd [#allocation3], 4294966784 }
  0x18   :  { %270 = dma.done.wait [#allocation6], 256  }
  0x19   :  { %271 = vsyncadd [#allocation6], 4294967040  ;;  %v44_v0 = vlaneseq  ;;  %v276_v1 = vmov 1983009808   ;;  %v40_v13 = vld [vmem:[#allocation5] sm:$0xff]  ;;  %v41_v19 = vld [vmem:[#allocation5 + $0x8] sm:$0xff] }
  0x1a   :  { %v111_v2 = vunpack.c.l.s4 %v276_v1  ;;  %v36_v36 = vld [vmem:[#allocation2] sm:$0xff]  ;;  %v37_v42 = vld [vmem:[#allocation2 + $0x8] sm:$0xff]  ;;  %v38_v50 = vld [vmem:[#allocation2 + $0x10] sm:$0xff]  ;;  %s277_s0 = smov [#allocation7]  }
  0x1b   :  { %v45_v3 = vshrl.u32 %v44_v0, 7  ;;  %v39_v57 = vld [vmem:[#allocation2 + $0x18] sm:$0xff]  ;;  %s194_s1 = sshll.u32 %s277_s0, 4  ;;  %s195_s1 = int_to_ptr.vmem [resolvable:$true] %s194_s1 }
  0x1c   :  { %v112_v4 = vunpack.c.0.s8 %v111_v2  ;;  %s248_s19 = scalar_lea.vmem %s195_s1, 512  ;;  %p253_p11 = scmp.lt.s32.totalorder %s195_s1, %s195_s1 }
  0x1d   :  { %v46_v5 = vsub.s32 0, %v45_v3  ;;  %v50_v6 = vsub.s32 1, %v45_v3  ;;  %v54_v7 = vsub.s32 2, %v45_v3  ;;  %v58_v8 = vsub.s32 3, %v45_v3  ;;  %p249_p10 = scmp.ne.s32.totalorder %s195_s1, %s248_s19  ;;  %p254_p12 = scmp.lt.s32.totalorder %s248_s19, %s248_s19 }
  0x1e   :  { %v62_v9 = vsub.s32 4, %v45_v3  ;;  %v66_v10 = vsub.s32 5, %v45_v3  ;;  %v70_v11 = vsub.s32 6, %v45_v3  ;;  %v74_v12 = vsub.s32 7, %v45_v3 }
  0x1f   :  { %v115_v14 = vsub.s32 %v112_v4, %v45_v3  ;;  %v47_v15 = vrot.slane %v40_v13, %v46_v5  ;;  %v51_v16 = vrot.slane %v40_v13, %v50_v6  ;;  %v55_v17 = vrot.slane %v40_v13, %v54_v7  ;;  %p255_p13 = por %p254_p12, %p253_p11 }
  0x20   :  { %v59_v18 = vrot.slane %v40_v13, %v58_v8  ;;  %v63_v20 = vrot.slane %v40_v13, %v62_v9  ;;  %v67_v21 = vrot.slane %v40_v13, %v66_v10  ;;  %v71_v22 = vrot.slane %v40_v13, %v70_v11 }
  0x21   :  { %v75_v23 = vrot.slane %v40_v13, %v74_v12  ;;  %v108_v24 = vcombine.low %v47_v15, %v51_v16  ;;  %v79_v26 = vrot.slane %v41_v19, %v46_v5  ;;  %v83_v27 = vrot.slane %v41_v19, %v50_v6  ;;  %p256_p0 = pnand %p255_p13, %p249_p10 }
  0x22   :  { %v109_v25 = vcombine.low %v55_v17, %v59_v18  ;;  %v125_v28 = vcombine.low %v63_v20, %v67_v21  ;;  %v87_v30 = vrot.slane %v41_v19, %v54_v7  ;;  %v91_v31 = vrot.slane %v41_v19, %v58_v8 }
  0x23   :  { %v126_v29 = vcombine.low %v71_v22, %v75_v23  ;;  %v116_v32 = vrot.slane %v108_v24, %v115_v14  ;;  %v142_v34 = vcombine.low %v79_v26, %v83_v27  ;;  %v95_v35 = vrot.slane %v41_v19, %v62_v9 }
  0x24   :  { %v123_v33 = vrot.slane %v109_v25, %v115_v14  ;;  %v133_v37 = vrot.slane %v125_v28, %v115_v14  ;;  %v143_v39 = vcombine.low %v87_v30, %v91_v31  ;;  %v99_v40 = vrot.slane %v41_v19, %v66_v10 }
  0x25   :  { %v140_v38 = vrot.slane %v126_v29, %v115_v14  ;;  %v150_v43 = vrot.slane %v142_v34, %v115_v14  ;;  %v103_v44 = vrot.slane %v41_v19, %v70_v11  ;;  %v107_v45 = vrot.slane %v41_v19, %v74_v12 }
  0x26   :  { %v124_v41 = vcombine.low %v116_v32, %v123_v33  ;;  %v157_v47 = vrot.slane %v143_v39, %v115_v14  ;;  %v159_v48 = vcombine.low %v95_v35, %v99_v40 }
  0x27   :  { %v141_v46 = vcombine.low %v133_v37, %v140_v38  ;;  %v160_v51 = vcombine.low %v103_v44, %v107_v45 }
  0x28   :  { %v180_v49 = vmul.f32 %v124_v41, %v36_v36  ;;  %v158_v53 = vcombine.low %v150_v43, %v157_v47  ;;  %v167_v54 = vrot.slane %v159_v48, %v115_v14 }
  0x29   :  { %v181_v52 = vmul.f32 %v141_v46, %v37_v42  ;;  %v174_v55 = vrot.slane %v160_v51, %v115_v14 }
  0x2a   :  { %184 = vst [vmem:[#allocation7] sm:$0xff] %v180_v49  ;;  %v182_v56 = vmul.f32 %v158_v53, %v38_v50 }
  0x2b   :  { %185 = vst [vmem:[#allocation7 + $0x8] sm:$0xff] %v181_v52  ;;  %v175_v58 = vcombine.low %v167_v54, %v174_v55 }
  0x2c   :  { %186 = vst [vmem:[#allocation7 + $0x10] sm:$0xff] %v182_v56 }
  0x2d   :  { %v183_v59 = vmul.f32 %v175_v58, %v39_v57 }
  0x2f   :  { %187 = vst [vmem:[#allocation7 + $0x18] sm:$0xff] %v183_v59 }
  0x30   :  { %259 = shalt.err (!%p256_p0)
}
  0x31   :  { %197 = dma.vmem_to_hbm [thread:$0]  %s195_s1, 512, %s304_s2, [#allocation4]  }
  0x32   :  { %272 = dma.done.wait [#allocation4], 512  }
  0x33   :  { %273 = vsyncadd [#allocation4], 4294966784 }
  0x34   :  { %201 = vsyncpa [#allocation3], 1 }
  0x35   :  { %202 = vsyncpa [#allocation6], 1 }
  0x36   :  { %203 = vsyncpa [#allocation4], 1 }

</bundles_post_ra>
